<compile_context>
chip_gen: v7x
topology: tpu7x:2x2x1
jax: 0.10.0
libtpu: 0.0.40
codegen_flags: <defaults>
</compile_context>

<pallas_src>
import functools

import numpy as np

import jax
import jax.numpy as jnp
from jax.experimental import pallas as pl
from jax.experimental.pallas import tpu as pltpu


# ----------------------------------------------------------------------------
# Pallas kernel: fused fold-accumulate + normalization + constant Sa_GC add
# ----------------------------------------------------------------------------

def _agc_fold_kernel(*refs, n_planes, apply_scale):
    """Per grid step (b, row_tile, lane_tile); all blocks lane-dense:
         plane_refs[g]: (1, TR, TQ)   shifted fold placement g (f32 or bf16 transport)
         [invden_ref]:  (TR, TQ)      1 / fold(unfold(ones)); only when apply_scale
         add_ref:       (TR, 1)       constant-folded Sa_GC channel_add term
         o_ref:         (1, TR, TQ)   output block (f32)
    """
    plane_refs = refs[:n_planes]
    rest = refs[n_planes:]
    if apply_scale:
        invden_ref, add_ref, o_ref = rest
    else:
        add_ref, o_ref = rest

    acc = plane_refs[0][0].astype(jnp.float32)
    for g in range(1, n_planes):                 # static unroll, G = ceil(k/stride)^2
        acc = acc + plane_refs[g][0].astype(jnp.float32)
    if apply_scale:
        acc = acc * invden_ref[...]              # (TR, TQ)
    o_ref[0] = acc + add_ref[...]                # (TR, 1) broadcast over lanes


# ----------------------------------------------------------------------------
# Layout / tiling heuristics
# ----------------------------------------------------------------------------

def _pick_packing(C, HW):
    """Pack (C, HW) -> (C*R, HW/R) so the sublane dim is a multiple of 8 (full vregs)."""
    if C % 8 == 0:
        return 1
    for R in range(1, 65):
        if HW % R == 0 and HW // R >= 128 and (C * R) % 8 == 0:
            return R
    return 1                                      # fall back: accept sublane padding


def _pick_tiles(G, CR, Qp, B, plane_itemsize, apply_scale, budget_bytes=10 * 2**20):
    """Largest lane tile (multiple of 128, <= 2048) / row tile that keeps the
    double-buffered working set under `budget_bytes` (safe for v5e 16 MiB scoped
    default and v7x 64 MiB physical VMEM)."""
    q_cands = [t for t in range(min(Qp, 2048), 0, -128) if Qp % t == 0]
    if CR % 8 == 0:
        r_cands = [t for t in range(CR, 0, -8) if CR % t == 0]
    else:
        r_cands = [CR]
    tr, tq = r_cands[-1], q_cands[-1]
    done = False
    for cand_q in q_cands:
        for cand_r in r_cands:
            per_step = cand_r * cand_q * (
                G * plane_itemsize + (plane_itemsize if apply_scale else 0) + 4)
            if 2 * per_step <= budget_bytes:      # x2: double-buffered pipeline
                tr, tq = cand_r, cand_q
                done = True
                break
        if done:
            break
    # v7x has 2 TensorCores: guarantee >= 2 parallel grid units when possible.
    if B * (CR // tr) * (Qp // tq) < 2:
        if tq % 256 == 0:
            tq //= 2
        elif tr % 16 == 0:
            tr //= 2
    return tr, tq


# ----------------------------------------------------------------------------
# AGCBlock forward
# ----------------------------------------------------------------------------

def agc_block_forward(x, params, *, image_size, k, stride, padding=0,
                      transport_dtype=None):
    """AGCBlock.forward.  x: (B, C, H, W) float32 -> (B, C, H, W) float32."""
    assert padding == 0, "Unfold/Fold pairing in the reference is only consistent for padding=0"
    x = x.astype(jnp.float32)
    B, C, H, W = x.shape
    assert H == image_size and W == image_size
    s = stride
    Lh = (H - k) // s + 1
    Lw = (W - k) // s + 1
    HW = H * W
    nq = -(-k // s)                  # ceil(k / s)
    G = nq * nq

    # --- torch.nn.Unfold as ONE structured gather, written directly in the
    #     (B, C, k, k, Lh, Lw) memory order the downstream "broken view" needs ----------
    IY = (np.arange(k, dtype=np.int32)[:, None, None, None]
          + np.arange(Lh, dtype=np.int32)[None, None, :, None] * s)      # (k,1,Lh,1)
    IX = (np.arange(k, dtype=np.int32)[None, :, None, None]
          + np.arange(Lw, dtype=np.int32)[None, None, None, :] * s)      # (1,k,1,Lw)
    u6 = x[:, :, IY, IX]                                                 # (B,C,k,k,Lh,Lw)

    # --- the source's shape-invalid `view(batch_unfold, patchsize_unfold)` reshuffle ----
    # TODO(synk): the PyTorch `view(batch_unfold, patchsize_unfold)` is shape-invalid; as
    # before we implement the evident intent view(B, L, C*k*k) + transpose(2, 1).  Composed
    # with the forward raw `view(-1, C, k, k)` this is exactly a row-major reinterpretation
    # of u6 -- a FREE reshape (this removes both transpose passes of the old version).  The
    # constant-folded Sa_GC add lands on the true output channel and commutes with
    # fold + normalization, so it is applied in the kernel epilogue.
    q = u6.reshape(B, Lh, Lw, C, k, k)

    # --- sublane packing: (C, HW) -> (C*R, Q) so small C still fills (8,128) vregs -------
    R = _pick_packing(C, HW)
    CR, Q = C * R, HW // R
    Qp = -(-Q // 128) * 128          # lane dim padded to a multiple of 128 (unmasked vst)

    # --- torch.nn.Fold as G = ceil(k/s)^2 shifted non-overlapping placements, built
    #     directly from q (layout-only slice/transpose/pad), one lane-dense array each ----
    planes = []
    for qi in range(nq):
        wi = min(s, k - qi * s)
        for qj in range(nq):
            wj = min(s, k - qj * s)
            blk = q[:, :, :, :, qi * s:qi * s + wi, qj * s:qj * s + wj]  # (B,Lh,Lw,C,wi,wj)
            blk = jnp.transpose(blk, (0, 3, 1, 4, 2, 5))                 # (B,C,Lh,wi,Lw,wj)
            if wi < s or wj < s:
                blk = jnp.pad(blk, ((0, 0), (0, 0), (0, 0), (0, s - wi),
                                    (0, 0), (0, s - wj)))
            rs = blk.reshape(B, C, Lh * s, Lw * s)
            rkeep = min(Lh * s, H - qi * s)
            ckeep = min(Lw * s, W - qj * s)
            plane = jnp.pad(rs[:, :, :rkeep, :ckeep],
                            ((0, 0), (0, 0),
                             (qi * s, H - qi * s - rkeep),
                             (qj * s, W - qj * s - ckeep)))              # (B, C, H, W)
            plane = plane.reshape(B, CR, Q)
            if Qp > Q:
                plane = jnp.pad(plane, ((0, 0), (0, 0), (0, Qp - Q)))
            if transport_dtype is not None:
                plane = plane.astype(transport_dtype)
            planes.append(plane)

    # --- fold(unfold(ones)) is data-independent: trace-time numpy constant ---------------
    cnt_h = np.zeros(H, np.float64)
    for i in range(Lh):
        cnt_h[i * s:i * s + k] += 1.0
    cnt_w = np.zeros(W, np.float64)
    for j in range(Lw):
        cnt_w[j * s:j * s + k] += 1.0
    den = np.outer(cnt_h, cnt_w)
    apply_scale = not bool(np.all(den == 1.0))    # k == stride exact cover -> skip entirely
    # (den == 0 -> numerator == 0 too -> 0 * inf = NaN, matching the reference's 0/0.)
    inv = np.where(den > 0.0, 1.0 / np.where(den > 0.0, den, 1.0), np.inf)
    inv_packed = np.ones((CR, Qp), np.float32)
    inv_packed[:, :Q] = np.tile(inv.reshape(R, Q), (C, 1))

    # --- constant-folded Sa_GC channel_add term, broadcast over lanes in the epilogue ----
    add_packed = jnp.repeat(params["add_const"].astype(jnp.float32), R).reshape(CR, 1)

    # --- single fused Pallas kernel: sum G planes + 1/den + constant Sa_GC add -----------
    itemsize = jnp.dtype(transport_dtype).itemsize if transport_dtype is not None else 4
    TR, TQ = _pick_tiles(G, CR, Qp, B, itemsize, apply_scale)
    grid = (B, CR // TR, Qp // TQ)

    inputs = list(planes)
    in_specs = [pl.BlockSpec((1, TR, TQ), lambda b, ri, qi: (b, ri, qi)) for _ in range(G)]
    if apply_scale:
        inputs.append(jnp.asarray(inv_packed))
        in_specs.append(pl.BlockSpec((TR, TQ), lambda b, ri, qi: (ri, qi)))
    inputs.append(add_packed)
    in_specs.append(pl.BlockSpec((TR, 1), lambda b, ri, qi: (ri, 0)))

    kernel = functools.partial(_agc_fold_kernel, n_planes=G, apply_scale=apply_scale)
    out = pl.pallas_call(
        kernel,
        grid=grid,
        in_specs=in_specs,
        out_specs=pl.BlockSpec((1, TR, TQ), lambda b, ri, qi: (b, ri, qi)),
        out_shape=jax.ShapeDtypeStruct((B, CR, Qp), jnp.float32),
        compiler_params=pltpu.CompilerParams(
            dimension_semantics=("parallel", "parallel", "parallel"),
            vmem_limit_bytes=32 * 1024 * 1024),
    )(*inputs)

    if Qp > Q:
        out = out[:, :, :Q]
    return out.reshape(B, C, H, W)


# ----------------------------------------------------------------------------
# Deterministic parameter construction (PyTorch-style shapes / init bounds)
# ----------------------------------------------------------------------------

def init_agc_params(key, inplanes, ratio=0.5):
    C = inplanes
    P = int(C * ratio)
    ks = jax.random.split(key, 6)
    bc = 1.0 / float(np.sqrt(C))
    bp = 1.0 / float(np.sqrt(P))
    wm = jax.random.uniform(ks[0], (C,), jnp.float32, -bc, bc)     # conv_mask weight
    bm = jax.random.uniform(ks[1], (), jnp.float32, -bc, bc)       # conv_mask bias
    w1 = jax.random.uniform(ks[2], (P, C), jnp.float32, -bc, bc)   # channel_add_conv[0]
    b1 = jax.random.uniform(ks[3], (P,), jnp.float32, -bc, bc)
    gamma = jnp.ones((P,), jnp.float32)                            # LayerNorm([P,1,1])
    beta = jnp.zeros((P,), jnp.float32)
    w2 = jax.random.uniform(ks[4], (C, P), jnp.float32, -bp, bp)   # channel_add_conv[3]
    b2 = jax.random.uniform(ks[5], (C,), jnp.float32, -bp, bp)

    # Constant-fold the Sa_GC channel_add branch: the attention context is provably zero
    # (LogSoftmax over a size-1 dim), so channel_add_conv(context) depends on parameters
    # only.  conv_mask's wm/bm are mathematically dead in the forward (kept for reference).
    t = b1
    mu = jnp.mean(t)
    var = jnp.mean((t - mu) ** 2)
    t = (t - mu) / jnp.sqrt(var + 1e-5) * gamma + beta
    t = jnp.maximum(t, 0.0)
    add_const = w2 @ t + b2                                        # (C,)

    return {"wm": wm, "bm": bm, "w1": w1, "b1": b1, "gamma": gamma,
            "beta": beta, "w2": w2, "b2": b2, "add_const": add_const}


# ----------------------------------------------------------------------------
# Literal (loop-based) reference of the PyTorch semantics, for correctness check
# ----------------------------------------------------------------------------

def _sa_gc_reference(xin, p):
    """Literal Sa_GC on (N, C, k, k)."""
    N, C, k, _ = xin.shape
    xf = xin.reshape(N, C, k * k)
    cm = jnp.einsum('ncp,c->np', xf, p["wm"]) + p["bm"]
    lsm = jax.nn.log_softmax(cm[:, None, :], axis=1)[:, 0, :]      # size-1 dim -> zeros
    ctx = jnp.einsum('ncp,np->nc', xf, lsm)
    t = ctx @ p["w1"].T + p["b1"]
    mu = jnp.mean(t, axis=1, keepdims=True)
    var = jnp.mean((t - mu) ** 2, axis=1, keepdims=True)
    t = (t - mu) / jnp.sqrt(var + 1e-5) * p["gamma"] + p["beta"]
    t = jnp.maximum(t, 0.0)
    add = t @ p["w2"].T + p["b2"]
    return (xf + add[:, :, None]).reshape(N, C, k, k)


def agc_block_reference(x, params, *, k, stride):
    B, C, H, W = x.shape
    s = stride
    Lh = (H - k) // s + 1
    Lw = (W - k) // s + 1
    L, Ckk = Lh * Lw, C * k * k
    cols = [x[:, :, i * s:i * s + k, j * s:j * s + k].reshape(B, Ckk)
            for i in range(Lh) for j in range(Lw)]
    u = jnp.stack(cols, axis=-1)                                   # (B, Ckk, L)
    g = _sa_gc_reference(u.reshape(B * L, C, k, k), params)
    v = jnp.transpose(g.reshape(B, L, Ckk), (0, 2, 1))             # broken-view reinterpretation
    vp = v.reshape(B, C, k, k, L)
    num = jnp.zeros((B, C, H, W), jnp.float32)
    den = jnp.zeros((B, C, H, W), jnp.float32)
    idx = 0
    for i in range(Lh):
        for j in range(Lw):
            num = num.at[:, :, i * s:i * s + k, j * s:j * s + k].add(vp[..., idx])
            den = den.at[:, :, i * s:i * s + k, j * s:j * s + k].add(1.0)
            idx += 1
    return num / den


# ----------------------------------------------------------------------------

if __name__ == "__main__":
    B, C, IMAGE_SIZE = 2, 4, 16

    key = jax.random.PRNGKey(0)
    kp, kx = jax.random.split(key)
    params = init_agc_params(kp, C)
    x = jax.random.normal(kx, (B, C, IMAGE_SIZE, IMAGE_SIZE), jnp.float32)

    # 1) Overlapping patches (k % stride == 0): exercises the 1/den path, G = 4 planes.
    fwd = jax.jit(functools.partial(agc_block_forward,
                                    image_size=IMAGE_SIZE, k=8, stride=4))
    y = jax.block_until_ready(fwd(x, params))
    assert y.shape == (B, C, IMAGE_SIZE, IMAGE_SIZE), y.shape
    assert bool(jnp.all(jnp.isfinite(y)))
    y_ref = agc_block_reference(x, params, k=8, stride=4)
    assert bool(jnp.allclose(y, y_ref, rtol=2e-5, atol=2e-5)), \
        float(jnp.max(jnp.abs(y - y_ref)))

    # 2) Non-overlapping fast path (k == stride): den == 1, single plane, no scale input.
    fwd_no = jax.jit(functools.partial(agc_block_forward,
                                       image_size=IMAGE_SIZE, k=8, stride=8))
    y2 = jax.block_until_ready(fwd_no(x, params))
    y2_ref = agc_block_reference(x, params, k=8, stride=8)
    assert bool(jnp.allclose(y2, y2_ref, rtol=2e-5, atol=2e-5))

    # 3) k % stride != 0 (thin fold cells) with exact cover: exercises the wi < s padding.
    fwd_thin = jax.jit(functools.partial(agc_block_forward,
                                         image_size=IMAGE_SIZE, k=6, stride=5))
    y3 = jax.block_until_ready(fwd_thin(x, params))
    y3_ref = agc_block_reference(x, params, k=6, stride=5)
    assert bool(jnp.allclose(y3, y3_ref, rtol=2e-5, atol=2e-5))

    # 4) Optional bf16 transport of the fold planes (accumulation/output stay f32).
    fwd_bf16 = jax.jit(functools.partial(agc_block_forward, image_size=IMAGE_SIZE,
                                         k=8, stride=4, transport_dtype=jnp.bfloat16))
    y4 = jax.block_until_ready(fwd_bf16(x, params))
    assert bool(jnp.all(jnp.isfinite(y4)))
    assert float(jnp.max(jnp.abs(y4 - y_ref))) < 0.25   # bf16-transport tolerance

    print("KERNEL_OK")
</pallas_src>

<mosaic_0001>
module attributes {stable_mosaic.version = 11 : i64} {
  func.func @_agc_fold_kernel(%arg0: i32, %arg1: i32, %arg2: i32, %arg3: memref<1x8x128xf32, #tpu.memory_space<vmem>>, %arg4: memref<1x8x128xf32, #tpu.memory_space<vmem>>, %arg5: memref<1x8x128xf32, #tpu.memory_space<vmem>>, %arg6: memref<1x8x128xf32, #tpu.memory_space<vmem>>, %arg7: memref<8x128xf32, #tpu.memory_space<vmem>>, %arg8: memref<8x1xf32, #tpu.memory_space<vmem>>, %arg9: memref<1x8x128xf32, #tpu.memory_space<vmem>>) attributes {dimension_semantics = [#tpu.dimension_semantics<parallel>, #tpu.dimension_semantics<parallel>, #tpu.dimension_semantics<parallel>], iteration_bounds = array<i64: 2, 1, 1>, scalar_prefetch = 0 : i64, scratch_operands = 0 : i64, tpu.core_type = #tpu.core_type<tc>, window_params = [{transform_indices = @transform_0, window_bounds = array<i64: 1, 8, 128>}, {transform_indices = @transform_1, window_bounds = array<i64: 1, 8, 128>}, {transform_indices = @transform_2, window_bounds = array<i64: 1, 8, 128>}, {transform_indices = @transform_3, window_bounds = array<i64: 1, 8, 128>}, {transform_indices = @transform_4, window_bounds = array<i64: 8, 128>}, {transform_indices = @transform_5, window_bounds = array<i64: 8, 1>}, {transform_indices = @transform_6, window_bounds = array<i64: 1, 8, 128>}]} {
    %c0 = arith.constant 0 : index
    %c0_0 = arith.constant 0 : index
    %c0_1 = arith.constant 0 : index
    %0 = vector.load %arg3[%c0, %c0_0, %c0_1] : memref<1x8x128xf32, #tpu.memory_space<vmem>>, vector<1x8x128xf32>
    %1 = vector.shape_cast %0 : vector<1x8x128xf32> to vector<8x128xf32>
    %c0_2 = arith.constant 0 : index
    %c0_3 = arith.constant 0 : index
    %c0_4 = arith.constant 0 : index
    %2 = vector.load %arg4[%c0_2, %c0_3, %c0_4] : memref<1x8x128xf32, #tpu.memory_space<vmem>>, vector<1x8x128xf32>
    %3 = vector.shape_cast %2 : vector<1x8x128xf32> to vector<8x128xf32>
    %4 = arith.addf %1, %3 : vector<8x128xf32>
    %c0_5 = arith.constant 0 : index
    %c0_6 = arith.constant 0 : index
    %c0_7 = arith.constant 0 : index
    %5 = vector.load %arg5[%c0_5, %c0_6, %c0_7] : memref<1x8x128xf32, #tpu.memory_space<vmem>>, vector<1x8x128xf32>
    %6 = vector.shape_cast %5 : vector<1x8x128xf32> to vector<8x128xf32>
    %7 = arith.addf %4, %6 : vector<8x128xf32>
    %c0_8 = arith.constant 0 : index
    %c0_9 = arith.constant 0 : index
    %c0_10 = arith.constant 0 : index
    %8 = vector.load %arg6[%c0_8, %c0_9, %c0_10] : memref<1x8x128xf32, #tpu.memory_space<vmem>>, vector<1x8x128xf32>
    %9 = vector.shape_cast %8 : vector<1x8x128xf32> to vector<8x128xf32>
    %10 = arith.addf %7, %9 : vector<8x128xf32>
    %c0_11 = arith.constant 0 : index
    %c0_12 = arith.constant 0 : index
    %11 = vector.load %arg7[%c0_11, %c0_12] : memref<8x128xf32, #tpu.memory_space<vmem>>, vector<8x128xf32>
    %12 = arith.mulf %10, %11 : vector<8x128xf32>
    %c0_13 = arith.constant 0 : index
    %c0_14 = arith.constant 0 : index
    %13 = vector.load %arg8[%c0_13, %c0_14] : memref<8x1xf32, #tpu.memory_space<vmem>>, vector<8x1xf32>
    %14 = vector.broadcast %13 : vector<8x1xf32> to vector<8x128xf32>
    %15 = arith.addf %12, %14 : vector<8x128xf32>
    %c0_15 = arith.constant 0 : index
    %c0_16 = arith.constant 0 : index
    %c0_17 = arith.constant 0 : index
    %16 = vector.load %arg9[%c0_15, %c0_16, %c0_17] : memref<1x8x128xf32, #tpu.memory_space<vmem>>, vector<1x8x128xf32>
    %17 = vector.shape_cast %16 : vector<1x8x128xf32> to vector<8x128xf32>
    %18 = vector.shape_cast %15 : vector<8x128xf32> to vector<1x8x128xf32>
    tpu.vector_store %arg9[%c0_15, %c0_16, %c0_17], %18 {strides = array<i32>} : memref<1x8x128xf32, #tpu.memory_space<vmem>>, vector<1x8x128xf32>,
    return
  }
  func.func @transform_0(%arg0: i32, %arg1: i32, %arg2: i32) -> (i32, i32, i32) {
    %c0_i32 = arith.constant 0 : i32
    return %arg0, %arg1, %arg2 : i32, i32, i32
  }
  func.func @transform_1(%arg0: i32, %arg1: i32, %arg2: i32) -> (i32, i32, i32) {
    %c0_i32 = arith.constant 0 : i32
    return %arg0, %arg1, %arg2 : i32, i32, i32
  }
  func.func @transform_2(%arg0: i32, %arg1: i32, %arg2: i32) -> (i32, i32, i32) {
    %c0_i32 = arith.constant 0 : i32
    return %arg0, %arg1, %arg2 : i32, i32, i32
  }
  func.func @transform_3(%arg0: i32, %arg1: i32, %arg2: i32) -> (i32, i32, i32) {
    %c0_i32 = arith.constant 0 : i32
    return %arg0, %arg1, %arg2 : i32, i32, i32
  }
  func.func @transform_4(%arg0: i32, %arg1: i32, %arg2: i32) -> (i32, i32) {
    %c0_i32 = arith.constant 0 : i32
    return %arg1, %arg2 : i32, i32
  }
  func.func @transform_5(%arg0: i32, %arg1: i32, %arg2: i32) -> (i32, i32) {
    %c0_i32 = arith.constant 0 : i32
    %c0_i32_0 = arith.constant 0 : i32
    return %arg1, %c0_i32 : i32, i32
  }
  func.func @transform_6(%arg0: i32, %arg1: i32, %arg2: i32) -> (i32, i32, i32) {
    %c0_i32 = arith.constant 0 : i32
    return %arg0, %arg1, %arg2 : i32, i32, i32
  }
}

</mosaic_0001>

<bundles_post_ra>
// kernel: agc_block_forward.1
= control target key start
LH: loop header
LB: loop body
LE: loop exit
PB: predicated region body
PF: predicated region fallthrough
CT: control target
= control target key end

     0   :  { %s761_s21 = smov 0   ;;  %s763_s22 = smov 0   ;;  %s809_s0 = inlined_call_operand.vmem [shape: f32[2,8,128], index: 0, kind: input, shape index: {}]   ;;  %s810_s1 = inlined_call_operand.vmem [shape: f32[2,8,128], index: 1, kind: input, shape index: {}]   ;;  %s811_s2 = inlined_call_operand.vmem [shape: f32[2,8,128], index: 2, kind: input, shape index: {}]   ;;  %s812_s3 = inlined_call_operand.vmem [shape: f32[2,8,128], index: 3, kind: input, shape index: {}]   ;;  %s813_s4 = inlined_call_operand.vmem [shape: f32[8,128], index: 4, kind: input, shape index: {}]   ;;  %s814_s5 = inlined_call_operand.vmem [shape: f32[8,1], index: 5, kind: input, shape index: {}]   ;;  %s815_s6 = inlined_call_operand.vmem [shape: f32[2,8,128], index: 6, kind: output, shape index: {}]  }
   0x1   :  { %s765_s23 = smov 0  }
   0x2 LB: > { %s35_s24 = sadd.s32 1, %s719_s22  ;;  %p667_p0 = scmp.ge.s32.totalorder %s723_s23, 1  ;;  %s723_s23 = sphi %s765_s23, %s16_s23   ;;  %s719_s22 = sphi %s763_s22, %s817_s22   ;;  %s715_s21 = sphi %s761_s21, %s816_s21  }
   0x3   : > { %p37_p1 = scmp.ge.s32.totalorder %s35_s24, 2  ;;  %p324_p2 = scmp.lt.s32.totalorder %s723_s23, 3 }
   0x5   : > { %s819_s24 = smov (%p37_p1, %s35_s24), 0  ;;  %p325_p3 = pnand %p667_p0, %p324_p2 }
   0x6   : > { %v475_v0 = vld [vmem:[%s814_s5] sm:$0xff] (!%p325_p3)  ;;  %v725_v1 = vmov (!%p325_p3), 0   ;;  %p405_p4 = scmp.lt.s32.totalorder (!%p325_p3), %s715_s21, 1 }
   0x7   : > { %328 = sbr.rel (%p325_p3) target bundleno = 139 (0x8b), region = 44  ;;  %700 = vset.pattern.permute.xlu0 (!%p325_p3), %v725_v1  ;;  %v473_v9 = vld [vmem:[%s813_s4] sm:$0xff] (!%p325_p3) }
   0x8   : > { %478 = vperm.xlu0 (!%p325_p3), %700, %v475_v0  }
   0xe   : > { %s821_s21 = smov (!%p405_p4, %s715_s21), 1 }
   0xf   : > { %s668_s27 = sshll.u32 %s821_s21, 3 }
  0x10   : > { %s414_s30 = scalar_lea.vmem %s809_s0, %s668_s27  ;;  %s424_s9 = scalar_lea.vmem %s810_s1, %s668_s27 }
  0x11   : > { %v466_v2 = vld [vmem:[%s414_s30] sm:$0xff]  ;;  %s434_s12 = scalar_lea.vmem %s811_s2, %s668_s27  ;;  %s444_s15 = scalar_lea.vmem %s812_s3, %s668_s27 }
  0x12   : > { %v467_v3 = vld [vmem:[%s424_s9] sm:$0xff]  ;;  %s465_s20 = scalar_lea.vmem %s815_s6, %s668_s27 }
  0x13   : > { %v468_v4 = vadd.f32 %v467_v3, %v466_v2  ;;  %v469_v5 = vld [vmem:[%s434_s12] sm:$0xff] }
  0x14   : > { %v471_v7 = vld [vmem:[%s444_s15] sm:$0xff] }
  0x15   : > { %v470_v6 = vadd.f32 %v469_v5, %v468_v4 }
  0x17   : > { %v472_v8 = vadd.f32 %v471_v7, %v470_v6 }
  0x19   : > { %v474_v10 = vmul.f32 %v473_v9, %v472_v8 }
  0x87   : > { %v479_v11 = vpop.permute.xlu0 %478 }
  0x88   : > { %v481_v12 = vadd.f32 %v479_v11, %v474_v10 }
  0x8a   : > { %482 = vst [vmem:[%s465_s20] sm:$0xff] %v481_v12 }
  0x8b PF: > { %s16_s23 = sadd.s32 1, %s723_s23   ;;  %s816_s21 = smov %s719_s22 }
  0x8c   : > { %p13_p5 = scmp.ge.s32.totalorder %s16_s23, 4   ;;  %s817_s22 = smov %s819_s24 }
  0x8e   :  { %15 = sbr.rel (!%p13_p5) target bundleno = 2 (0x2), region = 89 }

</bundles_post_ra>
